<compile_context>
chip_gen: v6e
topology: v6e:2x2x1
jax: 0.10.0
libtpu: 0.0.40
codegen_flags: <defaults>
</compile_context>

<pallas_src>
import functools

import jax
import jax.numpy as jnp
from jax.experimental import pallas as pl
from jax.experimental.pallas import tpu as pltpu

# Deterministic "parameters" of the loss (position_color_loss defaults in SSN).
POS_WEIGHT = 0.003
COL_WEIGHT = 1.0
N_POS_CH = 2            # first two feature channels are (x, y) position
EPS = 1e-8
MAX_LANE_TILE = 8192    # lane-axis tile upper bound (sweepable 2048-8192)


def _round_up(x, m):
    return (x + m - 1) // m * m


# -----------------------------------------------------------------------------
# Fused kernel.
#   grid = (B, num_lane_tiles)
#   inputs : recon_feat (C, T), pixel_feat (C, T), probs (K, T), label (1, T)
#   scratch: acc_sq (C, T) f32, acc_nll (1, T) f32   (per-batch accumulators)
#   outputs: pos/col/nll per-batch partial sums, each broadcast into an
#            (8, 128)-aligned block so the final (B,) reduction happens in JAX.
# -----------------------------------------------------------------------------
def _fused_loss_kernel(recon_ref, pixel_ref, prob_ref, lab_ref,
                       pos_out, col_out, nll_out,
                       acc_sq, acc_nll,
                       *, hw, tile, n_pos_ch, eps, needs_mask):
    i = pl.program_id(1)

    @pl.when(i == 0)
    def _init():
        acc_sq[...] = jnp.zeros_like(acc_sq)
        acc_nll[...] = jnp.zeros_like(acc_nll)

    if needs_mask:
        lane = jax.lax.broadcasted_iota(jnp.int32, (1, tile), 1)
        valid = (i * tile + lane) < hw                     # (1, tile) bool

    # --- position/color squared error (pos/col split deferred to finalize) ---
    d = recon_ref[...] - pixel_ref[...]                    # (C, tile)
    sq = d * d
    if needs_mask:
        sq = jnp.where(valid, sq, 0.0)
    acc_sq[...] += sq                                      # pure VALU, no per-step reduce

    # --- NLL of already-normalized label probabilities -----------------------
    p = prob_ref[...]                                      # (K, tile)
    lab = lab_ref[...]                                     # (1, tile) int32
    cls = jax.lax.broadcasted_iota(jnp.int32, p.shape, 0)  # (K, tile)
    # Select the labeled class probability first, THEN log (1 log per pixel).
    p_sel = jnp.sum(jnp.where(cls == lab, p, 0.0), axis=0, keepdims=True)
    nll = -jnp.log(jnp.maximum(p_sel, eps))                # (1, tile)
    if needs_mask:
        nll = jnp.where(valid, nll, 0.0)
    acc_nll[...] += nll

    # --- finalize: single cross-lane reduction per batch ---------------------
    @pl.when(i == pl.num_programs(1) - 1)
    def _finalize():
        acc = acc_sq[...]
        row = jax.lax.broadcasted_iota(jnp.int32, acc.shape, 0)
        pos_sum = jnp.sum(jnp.where(row < n_pos_ch, acc, 0.0))
        col_sum = jnp.sum(acc) - pos_sum                   # col = total - pos
        nll_sum = jnp.sum(acc_nll[...])
        pos_out[...] = jnp.full(pos_out.shape, pos_sum, jnp.float32)
        col_out[...] = jnp.full(col_out.shape, col_sum, jnp.float32)
        nll_out[...] = jnp.full(nll_out.shape, nll_sum, jnp.float32)


def _fused_loss_sums(recon_feat2, pixel_feature, recon_label, label):
    B, C, H, W = recon_feat2.shape
    _, K, _, _ = recon_label.shape
    HW = H * W

    tile = min(MAX_LANE_TILE, _round_up(HW, 128))          # multiple of 128
    nt = pl.cdiv(HW, tile)

    # Pure reshapes (no transpose) => no extra HBM copy of the inputs.
    rf = recon_feat2.reshape(B, C, HW).astype(jnp.float32)
    pf = pixel_feature.reshape(B, C, HW).astype(jnp.float32)
    pr = recon_label.reshape(B, K, HW).astype(jnp.float32)
    lb = label.reshape(B, 1, HW).astype(jnp.int32)

    kernel = functools.partial(
        _fused_loss_kernel, hw=HW, tile=tile, n_pos_ch=N_POS_CH, eps=EPS,
        needs_mask=(HW % tile != 0))

    out_block = pl.BlockSpec((1, 8, 128), lambda b, i: (b, 0, 0))
    pos_p, col_p, nll_p = pl.pallas_call(
        kernel,
        out_shape=(jax.ShapeDtypeStruct((B, 8, 128), jnp.float32),
                   jax.ShapeDtypeStruct((B, 8, 128), jnp.float32),
                   jax.ShapeDtypeStruct((B, 8, 128), jnp.float32)),
        grid=(B, nt),
        in_specs=[pl.BlockSpec((None, C, tile), lambda b, i: (b, 0, i)),
                  pl.BlockSpec((None, C, tile), lambda b, i: (b, 0, i)),
                  pl.BlockSpec((None, K, tile), lambda b, i: (b, 0, i)),
                  pl.BlockSpec((None, 1, tile), lambda b, i: (b, 0, i))],
        out_specs=(out_block, out_block, out_block),
        scratch_shapes=[pltpu.VMEM((C, tile), jnp.float32),
                        pltpu.VMEM((1, tile), jnp.float32)],
        compiler_params=pltpu.CompilerParams(
            dimension_semantics=("parallel", "arbitrary"),
            vmem_limit_bytes=32 * 1024 * 1024),
    )(rf, pf, pr, lb)

    pos_sum = jnp.sum(pos_p[:, 0, 0])
    col_sum = jnp.sum(col_p[:, 0, 0])
    nll_sum = jnp.sum(nll_p[:, 0, 0])
    return pos_sum, col_sum, nll_sum


# -----------------------------------------------------------------------------
# Loss.forward equivalent
# -----------------------------------------------------------------------------
@jax.jit
def loss_forward(recon_feat2, pixel_feature, recon_label, label):
    B, C, H, W = recon_feat2.shape
    HW = H * W
    pos_sum, col_sum, nll_sum = _fused_loss_sums(
        recon_feat2, pixel_feature, recon_label, label)

    loss1 = (POS_WEIGHT * pos_sum / jnp.float32(B * N_POS_CH * HW)
             + COL_WEIGHT * col_sum / jnp.float32(B * (C - N_POS_CH) * HW))
    loss2 = nll_sum / jnp.float32(B * HW)          # NLLLoss mean reduction
    return loss1 + loss2, loss1, loss2


if __name__ == "__main__":
    key = jax.random.PRNGKey(0)
    k1, k2, k3, k4 = jax.random.split(key, 4)

    B, C_FEAT, H, W = 2, 5, 16, 16     # 2 position + 3 color feature channels
    K = 8                              # number of label classes (50 in SSN; small here)

    recon_feat2 = jax.random.normal(k1, (B, C_FEAT, H, W), dtype=jnp.float32)
    pixel_feature = jax.random.normal(k2, (B, C_FEAT, H, W), dtype=jnp.float32)
    # recon_label is a reconstructed (soft, normalized) label distribution.
    recon_label = jax.nn.softmax(
        jax.random.normal(k3, (B, K, H, W), dtype=jnp.float32), axis=1)
    label = jax.random.randint(k4, (B, H, W), 0, K, dtype=jnp.int32)

    total, l1, l2 = loss_forward(recon_feat2, pixel_feature, recon_label, label)
    jax.block_until_ready((total, l1, l2))

    # Pure-JAX reference check (same math, no Pallas).
    d = recon_feat2 - pixel_feature
    ref_l1 = (POS_WEIGHT * jnp.mean(d[:, :N_POS_CH] ** 2)
              + COL_WEIGHT * jnp.mean(d[:, N_POS_CH:] ** 2))
    oh = jax.nn.one_hot(label, K, axis=1, dtype=jnp.float32)
    ref_l2 = -jnp.mean(jnp.sum(oh * jnp.log(jnp.maximum(recon_label, EPS)), axis=1))
    assert jnp.allclose(l1, ref_l1, rtol=1e-5, atol=1e-5)
    assert jnp.allclose(l2, ref_l2, rtol=1e-5, atol=1e-5)
    assert jnp.allclose(total, ref_l1 + ref_l2, rtol=1e-5, atol=1e-5)

    print("KERNEL_OK")
</pallas_src>

<mosaic_0001>
module attributes {stable_mosaic.version = 11 : i64} {
  func.func @_fused_loss_kernel(%arg0: i32, %arg1: i32, %arg2: memref<1x5x256xf32, #tpu.memory_space<vmem>>, %arg3: memref<1x5x256xf32, #tpu.memory_space<vmem>>, %arg4: memref<1x8x256xf32, #tpu.memory_space<vmem>>, %arg5: memref<1x1x256xi32, #tpu.memory_space<vmem>>, %arg6: memref<1x8x128xf32, #tpu.memory_space<vmem>>, %arg7: memref<1x8x128xf32, #tpu.memory_space<vmem>>, %arg8: memref<1x8x128xf32, #tpu.memory_space<vmem>>, %arg9: memref<5x256xf32, #tpu.memory_space<vmem>>, %arg10: memref<1x256xf32, #tpu.memory_space<vmem>>) attributes {dimension_semantics = [#tpu.dimension_semantics<parallel>, #tpu.dimension_semantics<arbitrary>], iteration_bounds = array<i64: 2, 1>, scalar_prefetch = 0 : i64, scratch_operands = 2 : i64, tpu.core_type = #tpu.core_type<tc>, window_params = [{transform_indices = @transform_0, window_bounds = array<i64: 1, 5, 256>}, {transform_indices = @transform_1, window_bounds = array<i64: 1, 5, 256>}, {transform_indices = @transform_2, window_bounds = array<i64: 1, 8, 256>}, {transform_indices = @transform_3, window_bounds = array<i64: 1, 1, 256>}, {transform_indices = @transform_4, window_bounds = array<i64: 1, 8, 128>}, {transform_indices = @transform_5, window_bounds = array<i64: 1, 8, 128>}, {transform_indices = @transform_6, window_bounds = array<i64: 1, 8, 128>}]} {
    %c0_i32 = arith.constant 0 : i32
    %0 = arith.cmpi eq, %arg1, %c0_i32 : i32
    %1 = arith.extui %0 : i1 to i32
    %c0_i32_0 = arith.constant 0 : i32
    %2 = arith.cmpi ne, %1, %c0_i32_0 : i32
    scf.if %2 {
      %cst_25 = arith.constant 0.000000e+00 : f32
      %34 = vector.broadcast %cst_25 : f32 to vector<5x256xf32>
      %c0_26 = arith.constant 0 : index
      %c0_27 = arith.constant 0 : index
      %35 = vector.load %arg9[%c0_26, %c0_27] : memref<5x256xf32, #tpu.memory_space<vmem>>, vector<5x256xf32>
      tpu.vector_store %arg9[%c0_26, %c0_27], %34 {strides = array<i32>} : memref<5x256xf32, #tpu.memory_space<vmem>>, vector<5x256xf32>,
      %cst_28 = arith.constant 0.000000e+00 : f32
      %36 = vector.broadcast %cst_28 : f32 to vector<1x256xf32>
      %c0_29 = arith.constant 0 : index
      %c0_30 = arith.constant 0 : index
      %37 = vector.load %arg10[%c0_29, %c0_30] : memref<1x256xf32, #tpu.memory_space<vmem>>, vector<1x256xf32>
      tpu.vector_store %arg10[%c0_29, %c0_30], %36 {strides = array<i32>} : memref<1x256xf32, #tpu.memory_space<vmem>>, vector<1x256xf32>,
    } else {
    }
    %c0 = arith.constant 0 : index
    %c0_1 = arith.constant 0 : index
    %c0_2 = arith.constant 0 : index
    %3 = vector.load %arg2[%c0, %c0_1, %c0_2] : memref<1x5x256xf32, #tpu.memory_space<vmem>>, vector<1x5x256xf32>
    %4 = vector.shape_cast %3 : vector<1x5x256xf32> to vector<5x256xf32>
    %c0_3 = arith.constant 0 : index
    %c0_4 = arith.constant 0 : index
    %c0_5 = arith.constant 0 : index
    %5 = vector.load %arg3[%c0_3, %c0_4, %c0_5] : memref<1x5x256xf32, #tpu.memory_space<vmem>>, vector<1x5x256xf32>
    %6 = vector.shape_cast %5 : vector<1x5x256xf32> to vector<5x256xf32>
    %7 = arith.subf %4, %6 : vector<5x256xf32>
    %8 = arith.mulf %7, %7 : vector<5x256xf32>
    %c0_6 = arith.constant 0 : index
    %c0_7 = arith.constant 0 : index
    %9 = vector.load %arg9[%c0_6, %c0_7] : memref<5x256xf32, #tpu.memory_space<vmem>>, vector<5x256xf32>
    %10 = arith.addf %9, %8 : vector<5x256xf32>
    %c0_8 = arith.constant 0 : index
    %c0_9 = arith.constant 0 : index
    %11 = vector.load %arg9[%c0_8, %c0_9] : memref<5x256xf32, #tpu.memory_space<vmem>>, vector<5x256xf32>
    tpu.vector_store %arg9[%c0_8, %c0_9], %10 {strides = array<i32>} : memref<5x256xf32, #tpu.memory_space<vmem>>, vector<5x256xf32>,
    %c0_10 = arith.constant 0 : index
    %c0_11 = arith.constant 0 : index
    %c0_12 = arith.constant 0 : index
    %12 = vector.load %arg4[%c0_10, %c0_11, %c0_12] : memref<1x8x256xf32, #tpu.memory_space<vmem>>, vector<1x8x256xf32>
    %13 = vector.shape_cast %12 : vector<1x8x256xf32> to vector<8x256xf32>
    %c0_13 = arith.constant 0 : index
    %c0_14 = arith.constant 0 : index
    %c0_15 = arith.constant 0 : index
    %14 = vector.load %arg5[%c0_13, %c0_14, %c0_15] : memref<1x1x256xi32, #tpu.memory_space<vmem>>, vector<1x1x256xi32>
    %15 = vector.shape_cast %14 : vector<1x1x256xi32> to vector<1x256xi32>
    %16 = tpu.iota {dimensions = array<i32: 0>} : vector<8x256xi32>
    %17 = vector.broadcast %15 : vector<1x256xi32> to vector<8x256xi32>
    %18 = arith.cmpi eq, %16, %17 : vector<8x256xi32>
    %cst = arith.constant 0.000000e+00 : f32
    %19 = vector.broadcast %cst : f32 to vector<8x256xf32>
    %20 = arith.select %18, %13, %19 : vector<8x256xi1>, vector<8x256xf32>
    %cst_16 = arith.constant dense<0.000000e+00> : vector<256xf32>
    %21 = vector.multi_reduction <add>, %20, %cst_16 [0] : vector<8x256xf32> to vector<256xf32>
    %22 = vector.shape_cast %21 : vector<256xf32> to vector<1x256xf32>
    %cst_17 = arith.constant 9.99999993E-9 : f32
    %23 = vector.broadcast %cst_17 : f32 to vector<1x256xf32>
    %24 = arith.maximumf %22, %23 : vector<1x256xf32>
    %25 = math.log %24 : vector<1x256xf32>
    %cst_18 = arith.constant 0.000000e+00 : f32
    %26 = vector.broadcast %cst_18 : f32 to vector<1x256xf32>
    %27 = arith.subf %26, %25 : vector<1x256xf32>
    %c0_19 = arith.constant 0 : index
    %c0_20 = arith.constant 0 : index
    %28 = vector.load %arg10[%c0_19, %c0_20] : memref<1x256xf32, #tpu.memory_space<vmem>>, vector<1x256xf32>
    %29 = arith.addf %28, %27 : vector<1x256xf32>
    %c0_21 = arith.constant 0 : index
    %c0_22 = arith.constant 0 : index
    %30 = vector.load %arg10[%c0_21, %c0_22] : memref<1x256xf32, #tpu.memory_space<vmem>>, vector<1x256xf32>
    tpu.vector_store %arg10[%c0_21, %c0_22], %29 {strides = array<i32>} : memref<1x256xf32, #tpu.memory_space<vmem>>, vector<1x256xf32>,
    %c0_i32_23 = arith.constant 0 : i32
    %31 = arith.cmpi eq, %arg1, %c0_i32_23 : i32
    %32 = arith.extui %31 : i1 to i32
    %c0_i32_24 = arith.constant 0 : i32
    %33 = arith.cmpi ne, %32, %c0_i32_24 : i32
    scf.if %33 {
      %c0_25 = arith.constant 0 : index
      %c0_26 = arith.constant 0 : index
      %34 = vector.load %arg9[%c0_25, %c0_26] : memref<5x256xf32, #tpu.memory_space<vmem>>, vector<5x256xf32>
      %35 = tpu.iota {dimensions = array<i32: 0>} : vector<5x256xi32>
      %c2_i32 = arith.constant 2 : i32
      %36 = vector.broadcast %c2_i32 : i32 to vector<5x256xi32>
      %37 = arith.cmpi slt, %35, %36 : vector<5x256xi32>
      %cst_27 = arith.constant 0.000000e+00 : f32
      %38 = vector.broadcast %cst_27 : f32 to vector<5x256xf32>
      %39 = arith.select %37, %34, %38 : vector<5x256xi1>, vector<5x256xf32>
      %40 = vector.shape_cast %39 : vector<5x256xf32> to vector<1x5x256xf32>
      %cst_28 = arith.constant dense<0.000000e+00> : vector<1xf32>
      %41 = vector.multi_reduction <add>, %40, %cst_28 [1, 2] : vector<1x5x256xf32> to vector<1xf32>
      %42 = vector.shape_cast %41 : vector<1xf32> to vector<1x1x1xf32>
      %43 = vector.extract %42[0, 0, 0] : f32 from vector<1x1x1xf32>
      %44 = vector.shape_cast %34 : vector<5x256xf32> to vector<1x5x256xf32>
      %cst_29 = arith.constant dense<0.000000e+00> : vector<1xf32>
      %45 = vector.multi_reduction <add>, %44, %cst_29 [1, 2] : vector<1x5x256xf32> to vector<1xf32>
      %46 = vector.shape_cast %45 : vector<1xf32> to vector<1x1x1xf32>
      %47 = vector.extract %46[0, 0, 0] : f32 from vector<1x1x1xf32>
      %48 = arith.subf %47, %43 : f32
      %c0_30 = arith.constant 0 : index
      %c0_31 = arith.constant 0 : index
      %49 = vector.load %arg10[%c0_30, %c0_31] : memref<1x256xf32, #tpu.memory_space<vmem>>, vector<1x256xf32>
      %50 = vector.shape_cast %49 : vector<1x256xf32> to vector<1x1x256xf32>
      %cst_32 = arith.constant dense<0.000000e+00> : vector<1xf32>
      %51 = vector.multi_reduction <add>, %50, %cst_32 [1, 2] : vector<1x1x256xf32> to vector<1xf32>
      %52 = vector.shape_cast %51 : vector<1xf32> to vector<1x1x1xf32>
      %53 = vector.extract %52[0, 0, 0] : f32 from vector<1x1x1xf32>
      %54 = vector.broadcast %43 : f32 to vector<1x8x128xf32>
      %c0_33 = arith.constant 0 : index
      %c0_34 = arith.constant 0 : index
      %c0_35 = arith.constant 0 : index
      %55 = vector.load %arg6[%c0_33, %c0_34, %c0_35] : memref<1x8x128xf32, #tpu.memory_space<vmem>>, vector<1x8x128xf32>
      tpu.vector_store %arg6[%c0_33, %c0_34, %c0_35], %54 {strides = array<i32>} : memref<1x8x128xf32, #tpu.memory_space<vmem>>, vector<1x8x128xf32>,
      %56 = vector.broadcast %48 : f32 to vector<1x8x128xf32>
      %c0_36 = arith.constant 0 : index
      %c0_37 = arith.constant 0 : index
      %c0_38 = arith.constant 0 : index
      %57 = vector.load %arg7[%c0_36, %c0_37, %c0_38] : memref<1x8x128xf32, #tpu.memory_space<vmem>>, vector<1x8x128xf32>
      tpu.vector_store %arg7[%c0_36, %c0_37, %c0_38], %56 {strides = array<i32>} : memref<1x8x128xf32, #tpu.memory_space<vmem>>, vector<1x8x128xf32>,
      %58 = vector.broadcast %53 : f32 to vector<1x8x128xf32>
      %c0_39 = arith.constant 0 : index
      %c0_40 = arith.constant 0 : index
      %c0_41 = arith.constant 0 : index
      %59 = vector.load %arg8[%c0_39, %c0_40, %c0_41] : memref<1x8x128xf32, #tpu.memory_space<vmem>>, vector<1x8x128xf32>
      tpu.vector_store %arg8[%c0_39, %c0_40, %c0_41], %58 {strides = array<i32>} : memref<1x8x128xf32, #tpu.memory_space<vmem>>, vector<1x8x128xf32>,
    } else {
    }
    return
  }
  func.func @transform_0(%arg0: i32, %arg1: i32) -> (i32, i32, i32) {
    %c0_i32 = arith.constant 0 : i32
    %c0_i32_0 = arith.constant 0 : i32
    return %arg0, %c0_i32, %arg1 : i32, i32, i32
  }
  func.func @transform_1(%arg0: i32, %arg1: i32) -> (i32, i32, i32) {
    %c0_i32 = arith.constant 0 : i32
    %c0_i32_0 = arith.constant 0 : i32
    return %arg0, %c0_i32, %arg1 : i32, i32, i32
  }
  func.func @transform_2(%arg0: i32, %arg1: i32) -> (i32, i32, i32) {
    %c0_i32 = arith.constant 0 : i32
    %c0_i32_0 = arith.constant 0 : i32
    return %arg0, %c0_i32, %arg1 : i32, i32, i32
  }
  func.func @transform_3(%arg0: i32, %arg1: i32) -> (i32, i32, i32) {
    %c0_i32 = arith.constant 0 : i32
    %c0_i32_0 = arith.constant 0 : i32
    return %arg0, %c0_i32, %arg1 : i32, i32, i32
  }
  func.func @transform_4(%arg0: i32, %arg1: i32) -> (i32, i32, i32) {
    %c0_i32 = arith.constant 0 : i32
    %c0_i32_0 = arith.constant 0 : i32
    %c0_i32_1 = arith.constant 0 : i32
    return %arg0, %c0_i32, %c0_i32_0 : i32, i32, i32
  }
  func.func @transform_5(%arg0: i32, %arg1: i32) -> (i32, i32, i32) {
    %c0_i32 = arith.constant 0 : i32
    %c0_i32_0 = arith.constant 0 : i32
    %c0_i32_1 = arith.constant 0 : i32
    return %arg0, %c0_i32, %c0_i32_0 : i32, i32, i32
  }
  func.func @transform_6(%arg0: i32, %arg1: i32) -> (i32, i32, i32) {
    %c0_i32 = arith.constant 0 : i32
    %c0_i32_0 = arith.constant 0 : i32
    %c0_i32_1 = arith.constant 0 : i32
    return %arg0, %c0_i32, %c0_i32_0 : i32, i32, i32
  }
}

</mosaic_0001>

<bundles_post_ra>
// kernel: loss_forward.1
= control target key start
LH: loop header
LB: loop body
LE: loop exit
PB: predicated region body
PF: predicated region fallthrough
CT: control target
= control target key end

     0   :  { %s853_s21 = smov 0   ;;  %s855_s22 = smov 0   ;;  %s930_s0 = inlined_call_operand.vmem [shape: f32[2,5,256], index: 0, kind: input, shape index: {}]   ;;  %s931_s1 = inlined_call_operand.vmem [shape: f32[2,5,256], index: 1, kind: input, shape index: {}]   ;;  %s932_s2 = inlined_call_operand.vmem [shape: f32[2,8,256], index: 2, kind: input, shape index: {}]   ;;  %s933_s3 = inlined_call_operand.vmem [shape: s32[2,1,256], index: 3, kind: input, shape index: {}]   ;;  %s934_s4 = inlined_call_operand.vmem [shape: f32[2,8,128], index: 4, kind: output, shape index: {0}]   ;;  %s935_s5 = inlined_call_operand.vmem [shape: f32[2,8,128], index: 5, kind: output, shape index: {1}]   ;;  %s936_s6 = inlined_call_operand.vmem [shape: f32[2,8,128], index: 6, kind: output, shape index: {2}]  }
   0x1   :  { %s857_s23 = smov 0  }
   0x2 LB: > { %s29_s24 = sadd.s32 1, %s810_s22  ;;  %p740_p0 = scmp.ge.s32.totalorder %s814_s23, 1  ;;  %s814_s23 = sphi %s857_s23, %s17_s23   ;;  %s810_s22 = sphi %s855_s22, %s940_s22   ;;  %s806_s21 = sphi %s853_s21, %s939_s21  }
   0x3   : > { %p31_p1 = scmp.ge.s32.totalorder %s29_s24, 2  ;;  %p286_p2 = scmp.lt.s32.totalorder %s814_s23, 3 }
   0x5   : > { %s942_s24 = smov (%p31_p1, %s29_s24), 0  ;;  %p287_p3 = pnand %p740_p0, %p286_p2 }
   0x6   : > { %p354_p4 = scmp.lt.s32.totalorder (!%p287_p3), %s806_s21, 1 }
   0x7   : > { %290 = sbr.rel (%p287_p3) target bundleno = 278 (0x116), region = 36 }
   0xc   : > { %v410_v0 = vlaneseq  ;;  %v816_v1 = vmov 0.0   ;;  %s944_s21 = smov (!%p354_p4, %s806_s21), 1  ;;  %vm499_vm4 = vcmask 1044480   ;;  %v817_v49 = vmov 1966171168  }
   0xd   : > { %408 = vst [vmem:[#allocation2] sm:$0x1f] %v816_v1  ;;  %409 = vst [vmem:[#allocation2 + $0x8] sm:$0x1f] %v816_v1  ;;  %s753_s25 = sshll.u32 %s944_s21, 4  ;;  %s747_s26 = sshll.u32 %s944_s21, 1  ;;  %v471_v50 = vunpack.c.l.s4 %v817_v49 }
   0xe   : > { %vm873_vm0 = vcmp.lt.s32.totalorder %v410_v0, 256  ;;  %v877_v3 = vshrl.u32 %v410_v0, 7  ;;  %s361_s29 = scalar_lea.vmem %s930_s0, %s753_s25  ;;  %s371_s8 = scalar_lea.vmem %s931_s1, %s753_s25  ;;  %vm537_vm5 = vcmask 1040384  }
   0xf   : > { %414 = vst.msk [vmem:[#allocation3] sm:$0x3] %vm873_vm0, %v816_v1  ;;  %v415_v6 = vld [vmem:[%s361_s29] sm:$0x1f]  ;;  %v416_v7 = vld [vmem:[%s361_s29 + $0x8] sm:$0x1f]  ;;  %s381_s11 = scalar_lea.vmem %s932_s2, %s753_s25  ;;  %s390_s14 = scalar_lea.vmem %s933_s3, %s747_s26  ;;  %v472_v52 = vunpack.c.0.s8 %v471_v50 }
  0x10   : > { %v436_v4 = vsub.s32 0, %v877_v3  ;;  %v440_v5 = vsub.s32 1, %v877_v3  ;;  %v417_v8 = vld [vmem:[%s371_s8] sm:$0x1f]  ;;  %v418_v9 = vld [vmem:[%s371_s8 + $0x8] sm:$0x1f] }
  0x11   : > { %v419_v10 = vsub.f32 %v415_v6, %v417_v8  ;;  %v420_v11 = vsub.f32 %v416_v7, %v418_v9  ;;  %v431_v13 = vld [vmem:[%s390_s14] sm:$0x3]  ;;  %v430_v17 = vld [vmem:[%s381_s11 + $0x8] sm:$0xff]  ;;  %vm496_vm3 = vcmp.lt.s32.totalorder %v877_v3, 2  ;;  %v475_v58 = vsub.s32 %v472_v52, %v877_v3  ;;  %s748_s15 = sshll.u32 %s944_s21, 3 }
  0x12   : > { %v429_v16 = vld [vmem:[%s381_s11] sm:$0xff]  ;;  %v437_v18 = vrot.slane %v431_v13, %v436_v4  ;;  %v441_v19 = vrot.slane %v431_v13, %v440_v5  ;;  %s395_s18 = scalar_lea.vmem %s934_s4, %s748_s15  ;;  %s399_s27 = scalar_lea.vmem %s935_s5, %s748_s15 }
  0x13   : > { %v421_v14 = vmul.f32 %v419_v10, %v419_v10  ;;  %v422_v20 = vmul.f32 %v420_v11, %v420_v11  ;;  %s403_s7 = scalar_lea.vmem %s936_s6, %s748_s15 }
  0x14   : > { %v423_v12 = vld [vmem:[#allocation2] sm:$0x1f]  ;;  %v424_v15 = vld [vmem:[#allocation2 + $0x8] sm:$0x1f]  ;;  %vm442_vm1 = vcmp.eq.s32.totalorder %v877_v3, %v437_v18  ;;  %vm443_vm2 = vcmp.eq.s32.totalorder %v877_v3, %v441_v19 }
  0x15   : > { %v425_v21 = vadd.f32 %v423_v12, %v421_v14  ;;  %v426_v22 = vadd.f32 %v424_v15, %v422_v20  ;;  %v444_v23 = vsel %vm442_vm1, %v429_v16, 0.0  ;;  %v445_v24 = vsel %vm443_vm2, %v430_v17, 0.0 }
  0x16   : > { %v446_v25 = vrot.slane %v444_v23, 4  ;;  %v452_v26 = vrot.slane %v445_v24, 4  ;;  %v466_v61 = vld [vmem:[#allocation3] sm:$0x3] }
  0x17   : > { %427 = vst [vmem:[#allocation2] sm:$0x1f] %v425_v21  ;;  %428 = vst [vmem:[#allocation2 + $0x8] sm:$0x1f] %v426_v22 }
  0x18   : > { %v447_v27 = vadd.f32 %v446_v25, %v444_v23  ;;  %v453_v28 = vadd.f32 %v452_v26, %v445_v24 }
  0x1a   : > { %v448_v29 = vrot.slane %v447_v27, 2  ;;  %v454_v30 = vrot.slane %v453_v28, 2 }
  0x1c   : > { %v449_v31 = vadd.f32 %v448_v29, %v447_v27  ;;  %v455_v32 = vadd.f32 %v454_v30, %v453_v28 }
  0x1e   : > { %v494_v33 = vld [vmem:[#allocation2] sm:$0x1f]  ;;  %v495_v34 = vld [vmem:[#allocation2 + $0x8] sm:$0x1f]  ;;  %v450_v36 = vrot.slane %v449_v31, 1  ;;  %v456_v37 = vrot.slane %v455_v32, 1 }
  0x1f   : > { %v497_v35 = vsel %vm496_vm3, %v494_v33, 0.0  ;;  %v498_v38 = vsel %vm496_vm3, %v495_v34, 0.0  ;;  %v512_v40 = vsel %vm499_vm4, %v494_v33, 0.0  ;;  %v513_v42 = vsel %vm499_vm4, %v495_v34, 0.0 }
  0x20   : > { %v500_v39 = vsel %vm499_vm4, %v497_v35, 0.0  ;;  %v501_v41 = vsel %vm499_vm4, %v498_v38, 0.0  ;;  %v451_v43 = vadd.f32 %v450_v36, %v449_v31  ;;  %v457_v44 = vadd.f32 %v456_v37, %v455_v32 }
  0x21   : > { %v502_v45 = vadd.f32 %v501_v41, %v500_v39  ;;  %v514_v48 = vadd.f32 %v513_v42, %v512_v40 }
  0x22   : > { %v458_v46 = vmax.f32 %v451_v43, 1e-08  ;;  %v459_v47 = vmax.f32 %v457_v44, 1e-08 }
  0x23   : > { %503 = vadd.xlane.f32.xlu0 %v502_v45 }
  0x24   : > { %788 = vlog2.f32 %v458_v46 }
  0x25   : > { %790 = vlog2.f32 %v459_v47 }
  0x27   : > { %515 = vadd.xlane.f32.xlu0 %v514_v48 }
  0x31   : > { %v789_v51 = vpop.eup %788 }
  0x32   : > { %v791_v53 = vpop.eup %790  ;;  %v461_v54 = vmul.f32 0.6931472, %v789_v51 }
  0x33   : > { %v463_v55 = vmul.f32 0.6931472, %v791_v53 }
  0x34   : > { %v464_v56 = vsub.f32 0.0, %v461_v54 }
  0x35   : > { %v465_v57 = vsub.f32 0.0, %v463_v55 }
  0x37   : > { %v469_v59 = vcombine.low %v464_v56, %v465_v57 }
  0x39   : > { %v476_v60 = vrot.slane %v469_v59, %v475_v58 }
  0x3b   : > { %v483_v62 = vrot.slane %v476_v60, %v475_v58 }
  0x3d   : > { %v485_v63 = vadd.f32 %v483_v62, %v466_v61 }
  0x3f   : > { %490 = vst.msk [vmem:[#allocation3] sm:$0x3] %vm873_vm0, %v485_v63 }
  0x46   : > { %v525_v0 = vld [vmem:[#allocation3] sm:$0x3] }
  0x47   : > { %v530_v1 = vrot.slane %v525_v0, %v436_v4  ;;  %v534_v6 = vrot.slane %v525_v0, %v440_v5 }
  0x49   : > { %v538_v7 = vsel %vm537_vm5, %v530_v1, 0.0  ;;  %v539_v8 = vsel %vm537_vm5, %v534_v6, 0.0 }
  0x4a   : > { %v540_v9 = vadd.f32 %v539_v8, %v538_v7 }
  0x4c   : > { %541 = vadd.xlane.f32.xlu1 %v540_v9 }
  0xac   : > { %v504_v10 = vpop.xlane.xlu0 %503 }
  0xad   : > { %v505_v11 = vrot.slane %v504_v10, 4 }
  0xaf   : > { %v506_v12 = vadd.f32 %v505_v11, %v504_v10 }
  0xb0   : > { %v516_v13 = vpop.xlane.xlu0 %515 }
  0xb1   : > { %v507_v14 = vrot.slane %v506_v12, 2  ;;  %v517_v15 = vrot.slane %v516_v13, 4 }
  0xb3   : > { %v518_v2 = vadd.f32 %v517_v15, %v516_v13  ;;  %v508_v16 = vadd.f32 %v507_v14, %v506_v12 }
  0xb5   : > { %v519_v17 = vrot.slane %v518_v2, 2  ;;  %v509_v18 = vrot.slane %v508_v16, 1 }
  0xb7   : > { %v520_v19 = vadd.f32 %v519_v17, %v518_v2  ;;  %v510_v4 = vadd.f32 %v509_v18, %v508_v16 }
  0xb9   : > { %756 = vpush %v510_v4  ;;  %v521_v3 = vrot.slane %v520_v19, 1 }
  0xbb   : > { %v522_v5 = vadd.f32 %v521_v3, %v520_v19 }
  0xbd   : > { %758 = vpush %v522_v5 }
  0xd5   : > { %v542_v20 = vpop.xlane.xlu1 %541 }
  0xd6   : > { %v543_v21 = vrot.slane %v542_v20, 4 }
  0xd8   : > { %v544_v22 = vadd.f32 %v543_v21, %v542_v20 }
  0xda   : > { %v545_v23 = vrot.slane %v544_v22, 2 }
  0xdc   : > { %v546_v24 = vadd.f32 %v545_v23, %v544_v22 }
  0xde   : > { %v547_v25 = vrot.slane %v546_v24, 1 }
  0xe0   : > { %v548_v26 = vadd.f32 %v547_v25, %v546_v24 }
  0xe2   : > { %760 = vpush %v548_v26 }
  0xea   : > { %s757_s19 = spop %756 }
  0xeb   : > { %v550_v27 = vstv %s757_s19 }
  0xec   : > { %551 = vst [vmem:[%s395_s18] sm:$0xff] %v550_v27 }
  0xee   : > { %s759_s20 = spop %758 }
  0xef   : > { %s524_s28 = ssub.f32 %s759_s20, %s757_s19 }
  0xf1   : > { %v552_v28 = vstv %s524_s28 }
  0xf2   : > { %553 = vst [vmem:[%s399_s27] sm:$0xff] %v552_v28 }
 0x113   : > { %s761_s21 = spop %760 }
 0x114   : > { %v554_v29 = vstv %s761_s21 }
 0x115   : > { %555 = vst [vmem:[%s403_s7] sm:$0xff] %v554_v29 }
 0x116 PF: > { %s17_s23 = sadd.s32 1, %s814_s23   ;;  %s939_s21 = smov %s810_s22 }
 0x117   : > { %p14_p5 = scmp.ge.s32.totalorder %s17_s23, 4   ;;  %s940_s22 = smov %s942_s24 }
 0x119   :  { %16 = sbr.rel (!%p14_p5) target bundleno = 2 (0x2), region = 107 }

</bundles_post_ra>
